<compile_context>
chip_gen: v6e
topology: v6e:2x2x1
jax: 0.10.0
libtpu: 0.0.40
codegen_flags: <defaults>
</compile_context>

<pallas_src>
import functools

import jax
import jax.numpy as jnp
from jax import lax
from jax.experimental import pallas as pl
from jax.experimental.pallas import tpu as pltpu


def _spatial_attention_kernel(w_ref, b_ref, x_ref, o_ref, mx_ref, sm_ref,
                              *, K, H, W, C, Cc, pad):
    """Grid = (batch, channel-chunk).  One batch element per b step.

    w_ref : SMEM (2*K*K,) f32   conv weight, flattened [in=0 (max), in=1 (avg)]
    b_ref : SMEM (1,)     f32   conv bias
    x_ref : VMEM (1, Cc, HW)    input channel chunk (lane-dense spatial layout)
    o_ref : VMEM (1, 1, HW)     attention map (NOT broadcast over channels)
    mx_ref: VMEM (8, HW) f32    running channel-max accumulator
    sm_ref: VMEM (8, HW) f32    running channel-sum accumulator
    """
    HW = H * W
    c_idx = pl.program_id(1)
    nc = pl.num_programs(1)

    # ---- init running accumulators at the first channel chunk ----
    @pl.when(c_idx == 0)
    def _init():
        mx_ref[...] = jnp.full((8, HW), -jnp.inf, dtype=jnp.float32)
        sm_ref[...] = jnp.zeros((8, HW), dtype=jnp.float32)

    # ---- accumulate this channel chunk: elementwise max/add only (VPU);
    #      the sublane (axis-0) reduction is deferred to the finalize step.
    R = 8
    n_full = Cc // R
    rem = Cc - n_full * R

    if n_full > 0:
        if n_full <= 8:
            for ci in range(n_full):
                blk = x_ref[0, ci * R:(ci + 1) * R, :].astype(jnp.float32)
                mx_ref[...] = jnp.maximum(mx_ref[...], blk)
                sm_ref[...] = sm_ref[...] + blk
        else:
            def body(ci, carry):
                start = pl.multiple_of(ci * R, R)
                blk = x_ref[0, pl.ds(start, R), :].astype(jnp.float32)
                mx_ref[...] = jnp.maximum(mx_ref[...], blk)
                sm_ref[...] = sm_ref[...] + blk
                return carry
            lax.fori_loop(0, n_full, body, 0, unroll=4)
    if rem > 0:
        blk = x_ref[0, n_full * R:Cc, :].astype(jnp.float32)
        mx_ref[0:rem, :] = jnp.maximum(mx_ref[0:rem, :], blk)
        sm_ref[0:rem, :] = sm_ref[0:rem, :] + blk
    # TODO(synk): when x is bf16 on v6e/v7x, keep the max path in bf16 to halve
    # vreg pressure (v5e has no bf16 VALU, so keep f32 there).

    # ---- finalize: one sublane reduce, KxK conv, sigmoid, single (1,HW) store
    @pl.when(c_idx == nc - 1)
    def _finalize():
        mx = jnp.max(mx_ref[...], axis=0, keepdims=True)              # (1, HW)
        av = jnp.sum(sm_ref[...], axis=0, keepdims=True) * (1.0 / C)  # (1, HW)
        pool = jnp.concatenate([mx, av], axis=0)                      # (2, HW)

        # Row / column index of every flattened spatial position.
        lane = lax.broadcasted_iota(jnp.int32, (1, HW), 1)
        if W > 0 and (W & (W - 1)) == 0:          # power-of-two fast path
            col = lane & (W - 1)
            row = lane >> (W.bit_length() - 1)
        else:
            col = lane % W
            row = lane // W

        use_roll = (HW % 128 == 0)

        def shift(v, off):
            # result[i] = v[:, i + off]; wrapped / out-of-image lanes are
            # masked by the per-tap row/col validity mask below.
            if off == 0:
                return v
            if use_roll:
                return pltpu.roll(v, shift=(-off) % HW, axis=1)
            rows = v.shape[0]
            z = jnp.zeros((rows, abs(off)), dtype=v.dtype)
            if off > 0:
                return jnp.concatenate([lax.slice(v, (0, off), (rows, HW)), z],
                                       axis=1)
            return jnp.concatenate([z, lax.slice(v, (0, 0), (rows, HW + off))],
                                   axis=1)

        # 2-in / 1-out KxK conv as statically unrolled rolled-tap MACs.
        acc = jnp.full((1, HW), b_ref[0], dtype=jnp.float32)
        for dy in range(K):
            oy = dy - pad
            for dx in range(K):
                ox = dx - pad
                off = oy * W + ox
                wm = w_ref[dy * K + dx]             # weight for max-pool input
                wa = w_ref[K * K + dy * K + dx]     # weight for avg-pool input
                rolled = shift(pool, off)           # one lane roll per tap
                tap = wm * rolled[0:1, :] + wa * rolled[1:2, :]
                conds = []
                if oy < 0:
                    conds.append(row >= -oy)
                elif oy > 0:
                    conds.append(row < H - oy)
                if ox < 0:
                    conds.append(col >= -ox)
                elif ox > 0:
                    conds.append(col < W - ox)
                if conds:
                    m = conds[0]
                    for extra in conds[1:]:
                        m = jnp.logical_and(m, extra)
                    tap = jnp.where(m, tap, 0.0)
                acc = acc + tap

        att = jax.nn.sigmoid(acc)                                    # (1, HW)
        o_ref[0] = att.astype(o_ref.dtype)


def _pick_c_tile(C, HW, itemsize, max_block_bytes=8 << 20):
    """Channel tile: divides C (no partial-block masking needed), multiple of 8
    (or equal to C), and fits the per-block VMEM budget."""
    max_tile = min(512, max(8, max_block_bytes // max(HW * itemsize, 1)))
    if C <= max_tile:
        return C
    t = (max_tile // 8) * 8
    while t >= 8:
        if C % t == 0:
            return t
        t -= 8
    # TODO(synk): mask partial channel blocks in-kernel instead of falling back
    # to a single big block for awkward (e.g. large prime) C.
    return C


def spatial_attention(x, weight, bias, kernel_size):
    """x: (B, C, H, W) NCHW. weight: (1, 2, K, K). bias: (1,).

    Returns the (B, C, H, W) attention map (sigmoid(conv) repeated over C),
    matching the PyTorch module's forward.
    """
    B, C, H, W = x.shape
    K = kernel_size
    assert K % 2 == 1, "Odd kernel size required"
    pad = (K - 1) // 2
    HW = H * W
    assert pad * W + pad < HW, "kernel too large for this spatial size"

    # Free contiguous reshape: lane-dense (B, C, H*W) view.
    x_flat = x.reshape(B, C, HW)
    w_flat = weight.astype(jnp.float32).reshape(-1)        # (2*K*K,)
    b_flat = bias.astype(jnp.float32).reshape(-1)          # (1,)

    itemsize = jnp.dtype(x.dtype).itemsize
    Cc = _pick_c_tile(C, HW, itemsize)
    nc = C // Cc if C % Cc == 0 else 1
    if C % Cc != 0:
        Cc = C

    # VMEM budget from the actual footprint (double-buffered blocks + scratch).
    in_block = Cc * HW * itemsize
    out_block = HW * itemsize
    scratch_bytes = 2 * 8 * HW * 4
    needed = 2 * in_block + 2 * out_block + scratch_bytes + (4 << 20)
    vmem_limit = int(min(max(needed, 16 << 20), 64 << 20))

    kernel = functools.partial(_spatial_attention_kernel,
                               K=K, H=H, W=W, C=C, Cc=Cc, pad=pad)

    att = pl.pallas_call(
        kernel,
        out_shape=jax.ShapeDtypeStruct((B, 1, HW), x.dtype),
        grid=(B, nc),
        in_specs=[
            pl.BlockSpec(memory_space=pltpu.MemorySpace.SMEM),   # conv weight
            pl.BlockSpec(memory_space=pltpu.MemorySpace.SMEM),   # conv bias
            pl.BlockSpec((1, Cc, HW), lambda b, c: (b, c, 0)),
        ],
        out_specs=pl.BlockSpec((1, 1, HW), lambda b, c: (b, 0, 0)),
        scratch_shapes=[
            pltpu.VMEM((8, HW), jnp.float32),   # running max accumulator
            pltpu.VMEM((8, HW), jnp.float32),   # running sum accumulator
        ],
        compiler_params=pltpu.CompilerParams(
            dimension_semantics=("parallel", "arbitrary"),
            vmem_limit_bytes=vmem_limit),
    )(w_flat, b_flat, x_flat)

    # TODO(synk): for B==1 on v7x (2 TensorCores) add a parallel H-strip /
    # C-chunk axis (with a small cross-core combine) so both cores get work;
    # and for large B with tiny C*HW, block several batch elements per step.
    # Channel broadcast is left to the consumer (fuses under jit) so the kernel
    # only writes 1*HW per batch element instead of C*HW.
    return jnp.broadcast_to(att.reshape(B, 1, H, W), (B, C, H, W))


def _reference(x, weight, bias):
    """Pure-JAX reference mirroring the PyTorch forward."""
    mx = jnp.max(x, axis=1, keepdims=True)
    av = jnp.mean(x, axis=1, keepdims=True)
    pool = jnp.concatenate([mx, av], axis=1)                     # (B, 2, H, W)
    conv = lax.conv_general_dilated(
        pool, weight, window_strides=(1, 1), padding="SAME",
        dimension_numbers=("NCHW", "OIHW", "NCHW"))
    conv = conv + bias.reshape(1, 1, 1, 1)
    conv = jnp.broadcast_to(conv, x.shape)                       # repeat over C
    return jax.nn.sigmoid(conv)


if __name__ == "__main__":
    B, C, H, W = 2, 4, 16, 16
    K = 3

    key = jax.random.PRNGKey(0)
    kx, kw, kb = jax.random.split(key, 3)
    x = jax.random.normal(kx, (B, C, H, W), dtype=jnp.float32)
    # Deterministic synthetic Conv2d(2 -> 1, KxK) parameters.
    fan_in = 2 * K * K
    bound = 1.0 / (fan_in ** 0.5)
    weight = jax.random.uniform(kw, (1, 2, K, K), jnp.float32, -bound, bound)
    bias = jax.random.uniform(kb, (1,), jnp.float32, -bound, bound)

    out = spatial_attention(x, weight, bias, K)
    out = jax.block_until_ready(out)

    ref = _reference(x, weight, bias)
    assert out.shape == (B, C, H, W)
    assert jnp.allclose(out, ref, atol=1e-5, rtol=1e-5), "mismatch vs reference"

    print("KERNEL_OK")
</pallas_src>

<mosaic_0001>
module attributes {stable_mosaic.version = 11 : i64} {
  func.func @_spatial_attention_kernel(%arg0: i32, %arg1: i32, %arg2: memref<18xf32, #tpu.memory_space<smem>>, %arg3: memref<1xf32, #tpu.memory_space<smem>>, %arg4: memref<1x4x256xf32, #tpu.memory_space<vmem>>, %arg5: memref<1x1x256xf32, #tpu.memory_space<vmem>>, %arg6: memref<8x256xf32, #tpu.memory_space<vmem>>, %arg7: memref<8x256xf32, #tpu.memory_space<vmem>>) attributes {dimension_semantics = [#tpu.dimension_semantics<parallel>, #tpu.dimension_semantics<arbitrary>], iteration_bounds = array<i64: 2, 1>, scalar_prefetch = 0 : i64, scratch_operands = 2 : i64, tpu.core_type = #tpu.core_type<tc>, window_params = [{transform_indices = @transform_0, window_bounds = array<i64: 18>}, {transform_indices = @transform_1, window_bounds = array<i64: 1>}, {transform_indices = @transform_2, window_bounds = array<i64: 1, 4, 256>}, {transform_indices = @transform_3, window_bounds = array<i64: 1, 1, 256>}]} {
    %c0_i32 = arith.constant 0 : i32
    %0 = arith.cmpi eq, %arg1, %c0_i32 : i32
    %1 = arith.extui %0 : i1 to i32
    %c0_i32_0 = arith.constant 0 : i32
    %2 = arith.cmpi ne, %1, %c0_i32_0 : i32
    scf.if %2 {
      %cst = arith.constant 0xFF800000 : f32
      %14 = vector.broadcast %cst : f32 to vector<8x256xf32>
      %c0_13 = arith.constant 0 : index
      %c0_14 = arith.constant 0 : index
      %15 = vector.load %arg6[%c0_13, %c0_14] : memref<8x256xf32, #tpu.memory_space<vmem>>, vector<8x256xf32>
      tpu.vector_store %arg6[%c0_13, %c0_14], %14 {strides = array<i32>} : memref<8x256xf32, #tpu.memory_space<vmem>>, vector<8x256xf32>,
      %cst_15 = arith.constant 0.000000e+00 : f32
      %16 = vector.broadcast %cst_15 : f32 to vector<8x256xf32>
      %c0_16 = arith.constant 0 : index
      %c0_17 = arith.constant 0 : index
      %17 = vector.load %arg7[%c0_16, %c0_17] : memref<8x256xf32, #tpu.memory_space<vmem>>, vector<8x256xf32>
      tpu.vector_store %arg7[%c0_16, %c0_17], %16 {strides = array<i32>} : memref<8x256xf32, #tpu.memory_space<vmem>>, vector<8x256xf32>,
    } else {
    }
    %c0 = arith.constant 0 : index
    %c0_1 = arith.constant 0 : index
    %c0_2 = arith.constant 0 : index
    %3 = vector.load %arg4[%c0, %c0_1, %c0_2] : memref<1x4x256xf32, #tpu.memory_space<vmem>>, vector<1x4x256xf32>
    %4 = vector.shape_cast %3 : vector<1x4x256xf32> to vector<4x256xf32>
    %c0_3 = arith.constant 0 : index
    %c0_4 = arith.constant 0 : index
    %5 = vector.load %arg6[%c0_3, %c0_4] : memref<8x256xf32, #tpu.memory_space<vmem>>, vector<4x256xf32>
    %6 = arith.maximumf %5, %4 : vector<4x256xf32>
    %c0_5 = arith.constant 0 : index
    %c0_6 = arith.constant 0 : index
    %7 = vector.load %arg6[%c0_5, %c0_6] : memref<8x256xf32, #tpu.memory_space<vmem>>, vector<4x256xf32>
    tpu.vector_store %arg6[%c0_5, %c0_6], %6 {strides = array<i32>} : memref<8x256xf32, #tpu.memory_space<vmem>>, vector<4x256xf32>,
    %c0_7 = arith.constant 0 : index
    %c0_8 = arith.constant 0 : index
    %8 = vector.load %arg7[%c0_7, %c0_8] : memref<8x256xf32, #tpu.memory_space<vmem>>, vector<4x256xf32>
    %9 = arith.addf %8, %4 : vector<4x256xf32>
    %c0_9 = arith.constant 0 : index
    %c0_10 = arith.constant 0 : index
    %10 = vector.load %arg7[%c0_9, %c0_10] : memref<8x256xf32, #tpu.memory_space<vmem>>, vector<4x256xf32>
    tpu.vector_store %arg7[%c0_9, %c0_10], %9 {strides = array<i32>} : memref<8x256xf32, #tpu.memory_space<vmem>>, vector<4x256xf32>,
    %c0_i32_11 = arith.constant 0 : i32
    %11 = arith.cmpi eq, %arg1, %c0_i32_11 : i32
    %12 = arith.extui %11 : i1 to i32
    %c0_i32_12 = arith.constant 0 : i32
    %13 = arith.cmpi ne, %12, %c0_i32_12 : i32
    scf.if %13 {
      %c0_13 = arith.constant 0 : index
      %c0_14 = arith.constant 0 : index
      %14 = vector.load %arg6[%c0_13, %c0_14] : memref<8x256xf32, #tpu.memory_space<vmem>>, vector<8x256xf32>
      %cst = arith.constant dense<0xFF800000> : vector<256xf32>
      %15 = vector.multi_reduction <maximumf>, %14, %cst [0] : vector<8x256xf32> to vector<256xf32>
      %16 = vector.shape_cast %15 : vector<256xf32> to vector<1x256xf32>
      %c0_15 = arith.constant 0 : index
      %c0_16 = arith.constant 0 : index
      %17 = vector.load %arg7[%c0_15, %c0_16] : memref<8x256xf32, #tpu.memory_space<vmem>>, vector<8x256xf32>
      %cst_17 = arith.constant dense<0.000000e+00> : vector<256xf32>
      %18 = vector.multi_reduction <add>, %17, %cst_17 [0] : vector<8x256xf32> to vector<256xf32>
      %19 = vector.shape_cast %18 : vector<256xf32> to vector<1x256xf32>
      %cst_18 = arith.constant 2.500000e-01 : f32
      %20 = vector.broadcast %cst_18 : f32 to vector<1x256xf32>
      %21 = arith.mulf %19, %20 : vector<1x256xf32>
      %22 = tpu.concatenate %16, %21 in 0 : vector<1x256xf32>, vector<1x256xf32> -> vector<2x256xf32>
      %23 = tpu.iota {dimensions = array<i32: 1>} : vector<1x256xi32>
      %c15_i32 = arith.constant 15 : i32
      %24 = vector.broadcast %c15_i32 : i32 to vector<1x256xi32>
      %25 = arith.andi %23, %24 : vector<1x256xi32>
      %c4_i32 = arith.constant 4 : i32
      %26 = vector.broadcast %c4_i32 : i32 to vector<1x256xi32>
      %27 = arith.shrsi %23, %26 : vector<1x256xi32>
      %c0_19 = arith.constant 0 : index
      %28 = memref.load %arg3[%c0_19] : memref<1xf32, #tpu.memory_space<smem>>
      %29 = vector.broadcast %28 : f32 to vector<1x256xf32>
      %c0_20 = arith.constant 0 : index
      %30 = memref.load %arg2[%c0_20] : memref<18xf32, #tpu.memory_space<smem>>
      %c9 = arith.constant 9 : index
      %31 = memref.load %arg2[%c9] : memref<18xf32, #tpu.memory_space<smem>>
      %c17_i32 = arith.constant 17 : i32
      %32 = tpu.dynamic_rotate %22 by %c17_i32 dim 1 : vector<2x256xf32>, i32 -> vector<2x256xf32>
      %33 = vector.extract_strided_slice %32 {offsets = [0, 0], sizes = [1, 256], strides = [1, 1]} : vector<2x256xf32> to vector<1x256xf32>
      %34 = vector.broadcast %30 : f32 to vector<1x256xf32>
      %35 = arith.mulf %34, %33 : vector<1x256xf32>
      %36 = vector.extract_strided_slice %32 {offsets = [1, 0], sizes = [1, 256], strides = [1, 1]} : vector<2x256xf32> to vector<1x256xf32>
      %37 = vector.broadcast %31 : f32 to vector<1x256xf32>
      %38 = arith.mulf %37, %36 : vector<1x256xf32>
      %39 = arith.addf %35, %38 : vector<1x256xf32>
      %c1_i32 = arith.constant 1 : i32
      %40 = vector.broadcast %c1_i32 : i32 to vector<1x256xi32>
      %41 = arith.cmpi sge, %27, %40 : vector<1x256xi32>
      %c1_i32_21 = arith.constant 1 : i32
      %42 = vector.broadcast %c1_i32_21 : i32 to vector<1x256xi32>
      %43 = arith.cmpi sge, %25, %42 : vector<1x256xi32>
      %44 = arith.andi %41, %43 : vector<1x256xi1>
      %cst_22 = arith.constant 0.000000e+00 : f32
      %45 = vector.broadcast %cst_22 : f32 to vector<1x256xf32>
      %46 = arith.select %44, %39, %45 : vector<1x256xi1>, vector<1x256xf32>
      %47 = arith.addf %29, %46 : vector<1x256xf32>
      %c1 = arith.constant 1 : index
      %48 = memref.load %arg2[%c1] : memref<18xf32, #tpu.memory_space<smem>>
      %c10 = arith.constant 10 : index
      %49 = memref.load %arg2[%c10] : memref<18xf32, #tpu.memory_space<smem>>
      %c16_i32 = arith.constant 16 : i32
      %50 = tpu.dynamic_rotate %22 by %c16_i32 dim 1 : vector<2x256xf32>, i32 -> vector<2x256xf32>
      %51 = vector.extract_strided_slice %50 {offsets = [0, 0], sizes = [1, 256], strides = [1, 1]} : vector<2x256xf32> to vector<1x256xf32>
      %52 = vector.broadcast %48 : f32 to vector<1x256xf32>
      %53 = arith.mulf %52, %51 : vector<1x256xf32>
      %54 = vector.extract_strided_slice %50 {offsets = [1, 0], sizes = [1, 256], strides = [1, 1]} : vector<2x256xf32> to vector<1x256xf32>
      %55 = vector.broadcast %49 : f32 to vector<1x256xf32>
      %56 = arith.mulf %55, %54 : vector<1x256xf32>
      %57 = arith.addf %53, %56 : vector<1x256xf32>
      %c1_i32_23 = arith.constant 1 : i32
      %58 = vector.broadcast %c1_i32_23 : i32 to vector<1x256xi32>
      %59 = arith.cmpi sge, %27, %58 : vector<1x256xi32>
      %cst_24 = arith.constant 0.000000e+00 : f32
      %60 = vector.broadcast %cst_24 : f32 to vector<1x256xf32>
      %61 = arith.select %59, %57, %60 : vector<1x256xi1>, vector<1x256xf32>
      %62 = arith.addf %47, %61 : vector<1x256xf32>
      %c2 = arith.constant 2 : index
      %63 = memref.load %arg2[%c2] : memref<18xf32, #tpu.memory_space<smem>>
      %c11 = arith.constant 11 : index
      %64 = memref.load %arg2[%c11] : memref<18xf32, #tpu.memory_space<smem>>
      %c15_i32_25 = arith.constant 15 : i32
      %65 = tpu.dynamic_rotate %22 by %c15_i32_25 dim 1 : vector<2x256xf32>, i32 -> vector<2x256xf32>
      %66 = vector.extract_strided_slice %65 {offsets = [0, 0], sizes = [1, 256], strides = [1, 1]} : vector<2x256xf32> to vector<1x256xf32>
      %67 = vector.broadcast %63 : f32 to vector<1x256xf32>
      %68 = arith.mulf %67, %66 : vector<1x256xf32>
      %69 = vector.extract_strided_slice %65 {offsets = [1, 0], sizes = [1, 256], strides = [1, 1]} : vector<2x256xf32> to vector<1x256xf32>
      %70 = vector.broadcast %64 : f32 to vector<1x256xf32>
      %71 = arith.mulf %70, %69 : vector<1x256xf32>
      %72 = arith.addf %68, %71 : vector<1x256xf32>
      %c1_i32_26 = arith.constant 1 : i32
      %73 = vector.broadcast %c1_i32_26 : i32 to vector<1x256xi32>
      %74 = arith.cmpi sge, %27, %73 : vector<1x256xi32>
      %c15_i32_27 = arith.constant 15 : i32
      %75 = vector.broadcast %c15_i32_27 : i32 to vector<1x256xi32>
      %76 = arith.cmpi slt, %25, %75 : vector<1x256xi32>
      %77 = arith.andi %74, %76 : vector<1x256xi1>
      %cst_28 = arith.constant 0.000000e+00 : f32
      %78 = vector.broadcast %cst_28 : f32 to vector<1x256xf32>
      %79 = arith.select %77, %72, %78 : vector<1x256xi1>, vector<1x256xf32>
      %80 = arith.addf %62, %79 : vector<1x256xf32>
      %c3 = arith.constant 3 : index
      %81 = memref.load %arg2[%c3] : memref<18xf32, #tpu.memory_space<smem>>
      %c12 = arith.constant 12 : index
      %82 = memref.load %arg2[%c12] : memref<18xf32, #tpu.memory_space<smem>>
      %c1_i32_29 = arith.constant 1 : i32
      %83 = tpu.dynamic_rotate %22 by %c1_i32_29 dim 1 : vector<2x256xf32>, i32 -> vector<2x256xf32>
      %84 = vector.extract_strided_slice %83 {offsets = [0, 0], sizes = [1, 256], strides = [1, 1]} : vector<2x256xf32> to vector<1x256xf32>
      %85 = vector.broadcast %81 : f32 to vector<1x256xf32>
      %86 = arith.mulf %85, %84 : vector<1x256xf32>
      %87 = vector.extract_strided_slice %83 {offsets = [1, 0], sizes = [1, 256], strides = [1, 1]} : vector<2x256xf32> to vector<1x256xf32>
      %88 = vector.broadcast %82 : f32 to vector<1x256xf32>
      %89 = arith.mulf %88, %87 : vector<1x256xf32>
      %90 = arith.addf %86, %89 : vector<1x256xf32>
      %c1_i32_30 = arith.constant 1 : i32
      %91 = vector.broadcast %c1_i32_30 : i32 to vector<1x256xi32>
      %92 = arith.cmpi sge, %25, %91 : vector<1x256xi32>
      %cst_31 = arith.constant 0.000000e+00 : f32
      %93 = vector.broadcast %cst_31 : f32 to vector<1x256xf32>
      %94 = arith.select %92, %90, %93 : vector<1x256xi1>, vector<1x256xf32>
      %95 = arith.addf %80, %94 : vector<1x256xf32>
      %c4 = arith.constant 4 : index
      %96 = memref.load %arg2[%c4] : memref<18xf32, #tpu.memory_space<smem>>
      %c13 = arith.constant 13 : index
      %97 = memref.load %arg2[%c13] : memref<18xf32, #tpu.memory_space<smem>>
      %98 = vector.extract_strided_slice %22 {offsets = [0, 0], sizes = [1, 256], strides = [1, 1]} : vector<2x256xf32> to vector<1x256xf32>
      %99 = vector.broadcast %96 : f32 to vector<1x256xf32>
      %100 = arith.mulf %99, %98 : vector<1x256xf32>
      %101 = vector.extract_strided_slice %22 {offsets = [1, 0], sizes = [1, 256], strides = [1, 1]} : vector<2x256xf32> to vector<1x256xf32>
      %102 = vector.broadcast %97 : f32 to vector<1x256xf32>
      %103 = arith.mulf %102, %101 : vector<1x256xf32>
      %104 = arith.addf %100, %103 : vector<1x256xf32>
      %105 = arith.addf %95, %104 : vector<1x256xf32>
      %c5 = arith.constant 5 : index
      %106 = memref.load %arg2[%c5] : memref<18xf32, #tpu.memory_space<smem>>
      %c14 = arith.constant 14 : index
      %107 = memref.load %arg2[%c14] : memref<18xf32, #tpu.memory_space<smem>>
      %c255_i32 = arith.constant 255 : i32
      %108 = tpu.dynamic_rotate %22 by %c255_i32 dim 1 : vector<2x256xf32>, i32 -> vector<2x256xf32>
      %109 = vector.extract_strided_slice %108 {offsets = [0, 0], sizes = [1, 256], strides = [1, 1]} : vector<2x256xf32> to vector<1x256xf32>
      %110 = vector.broadcast %106 : f32 to vector<1x256xf32>
      %111 = arith.mulf %110, %109 : vector<1x256xf32>
      %112 = vector.extract_strided_slice %108 {offsets = [1, 0], sizes = [1, 256], strides = [1, 1]} : vector<2x256xf32> to vector<1x256xf32>
      %113 = vector.broadcast %107 : f32 to vector<1x256xf32>
      %114 = arith.mulf %113, %112 : vector<1x256xf32>
      %115 = arith.addf %111, %114 : vector<1x256xf32>
      %c15_i32_32 = arith.constant 15 : i32
      %116 = vector.broadcast %c15_i32_32 : i32 to vector<1x256xi32>
      %117 = arith.cmpi slt, %25, %116 : vector<1x256xi32>
      %cst_33 = arith.constant 0.000000e+00 : f32
      %118 = vector.broadcast %cst_33 : f32 to vector<1x256xf32>
      %119 = arith.select %117, %115, %118 : vector<1x256xi1>, vector<1x256xf32>
      %120 = arith.addf %105, %119 : vector<1x256xf32>
      %c6 = arith.constant 6 : index
      %121 = memref.load %arg2[%c6] : memref<18xf32, #tpu.memory_space<smem>>
      %c15 = arith.constant 15 : index
      %122 = memref.load %arg2[%c15] : memref<18xf32, #tpu.memory_space<smem>>
      %c241_i32 = arith.constant 241 : i32
      %123 = tpu.dynamic_rotate %22 by %c241_i32 dim 1 : vector<2x256xf32>, i32 -> vector<2x256xf32>
      %124 = vector.extract_strided_slice %123 {offsets = [0, 0], sizes = [1, 256], strides = [1, 1]} : vector<2x256xf32> to vector<1x256xf32>
      %125 = vector.broadcast %121 : f32 to vector<1x256xf32>
      %126 = arith.mulf %125, %124 : vector<1x256xf32>
      %127 = vector.extract_strided_slice %123 {offsets = [1, 0], sizes = [1, 256], strides = [1, 1]} : vector<2x256xf32> to vector<1x256xf32>
      %128 = vector.broadcast %122 : f32 to vector<1x256xf32>
      %129 = arith.mulf %128, %127 : vector<1x256xf32>
      %130 = arith.addf %126, %129 : vector<1x256xf32>
      %c15_i32_34 = arith.constant 15 : i32
      %131 = vector.broadcast %c15_i32_34 : i32 to vector<1x256xi32>
      %132 = arith.cmpi slt, %27, %131 : vector<1x256xi32>
      %c1_i32_35 = arith.constant 1 : i32
      %133 = vector.broadcast %c1_i32_35 : i32 to vector<1x256xi32>
      %134 = arith.cmpi sge, %25, %133 : vector<1x256xi32>
      %135 = arith.andi %132, %134 : vector<1x256xi1>
      %cst_36 = arith.constant 0.000000e+00 : f32
      %136 = vector.broadcast %cst_36 : f32 to vector<1x256xf32>
      %137 = arith.select %135, %130, %136 : vector<1x256xi1>, vector<1x256xf32>
      %138 = arith.addf %120, %137 : vector<1x256xf32>
      %c7 = arith.constant 7 : index
      %139 = memref.load %arg2[%c7] : memref<18xf32, #tpu.memory_space<smem>>
      %c16 = arith.constant 16 : index
      %140 = memref.load %arg2[%c16] : memref<18xf32, #tpu.memory_space<smem>>
      %c240_i32 = arith.constant 240 : i32
      %141 = tpu.dynamic_rotate %22 by %c240_i32 dim 1 : vector<2x256xf32>, i32 -> vector<2x256xf32>
      %142 = vector.extract_strided_slice %141 {offsets = [0, 0], sizes = [1, 256], strides = [1, 1]} : vector<2x256xf32> to vector<1x256xf32>
      %143 = vector.broadcast %139 : f32 to vector<1x256xf32>
      %144 = arith.mulf %143, %142 : vector<1x256xf32>
      %145 = vector.extract_strided_slice %141 {offsets = [1, 0], sizes = [1, 256], strides = [1, 1]} : vector<2x256xf32> to vector<1x256xf32>
      %146 = vector.broadcast %140 : f32 to vector<1x256xf32>
      %147 = arith.mulf %146, %145 : vector<1x256xf32>
      %148 = arith.addf %144, %147 : vector<1x256xf32>
      %c15_i32_37 = arith.constant 15 : i32
      %149 = vector.broadcast %c15_i32_37 : i32 to vector<1x256xi32>
      %150 = arith.cmpi slt, %27, %149 : vector<1x256xi32>
      %cst_38 = arith.constant 0.000000e+00 : f32
      %151 = vector.broadcast %cst_38 : f32 to vector<1x256xf32>
      %152 = arith.select %150, %148, %151 : vector<1x256xi1>, vector<1x256xf32>
      %153 = arith.addf %138, %152 : vector<1x256xf32>
      %c8 = arith.constant 8 : index
      %154 = memref.load %arg2[%c8] : memref<18xf32, #tpu.memory_space<smem>>
      %c17 = arith.constant 17 : index
      %155 = memref.load %arg2[%c17] : memref<18xf32, #tpu.memory_space<smem>>
      %c239_i32 = arith.constant 239 : i32
      %156 = tpu.dynamic_rotate %22 by %c239_i32 dim 1 : vector<2x256xf32>, i32 -> vector<2x256xf32>
      %157 = vector.extract_strided_slice %156 {offsets = [0, 0], sizes = [1, 256], strides = [1, 1]} : vector<2x256xf32> to vector<1x256xf32>
      %158 = vector.broadcast %154 : f32 to vector<1x256xf32>
      %159 = arith.mulf %158, %157 : vector<1x256xf32>
      %160 = vector.extract_strided_slice %156 {offsets = [1, 0], sizes = [1, 256], strides = [1, 1]} : vector<2x256xf32> to vector<1x256xf32>
      %161 = vector.broadcast %155 : f32 to vector<1x256xf32>
      %162 = arith.mulf %161, %160 : vector<1x256xf32>
      %163 = arith.addf %159, %162 : vector<1x256xf32>
      %c15_i32_39 = arith.constant 15 : i32
      %164 = vector.broadcast %c15_i32_39 : i32 to vector<1x256xi32>
      %165 = arith.cmpi slt, %27, %164 : vector<1x256xi32>
      %c15_i32_40 = arith.constant 15 : i32
      %166 = vector.broadcast %c15_i32_40 : i32 to vector<1x256xi32>
      %167 = arith.cmpi slt, %25, %166 : vector<1x256xi32>
      %168 = arith.andi %165, %167 : vector<1x256xi1>
      %cst_41 = arith.constant 0.000000e+00 : f32
      %169 = vector.broadcast %cst_41 : f32 to vector<1x256xf32>
      %170 = arith.select %168, %163, %169 : vector<1x256xi1>, vector<1x256xf32>
      %171 = arith.addf %153, %170 : vector<1x256xf32>
      %172 = arith.negf %171 : vector<1x256xf32>
      %173 = math.exp %172 : vector<1x256xf32>
      %cst_42 = arith.constant 1.000000e+00 : f32
      %174 = vector.broadcast %cst_42 : f32 to vector<1x256xf32>
      %175 = arith.addf %174, %173 : vector<1x256xf32>
      %176 = arith.divf %174, %175 : vector<1x256xf32>
      %c0_43 = arith.constant 0 : index
      %c0_44 = arith.constant 0 : index
      %c0_45 = arith.constant 0 : index
      %177 = vector.load %arg5[%c0_43, %c0_44, %c0_45] : memref<1x1x256xf32, #tpu.memory_space<vmem>>, vector<1x1x256xf32>
      %178 = vector.shape_cast %177 : vector<1x1x256xf32> to vector<1x256xf32>
      %179 = vector.shape_cast %176 : vector<1x256xf32> to vector<1x1x256xf32>
      tpu.vector_store %arg5[%c0_43, %c0_44, %c0_45], %179 {strides = array<i32>} : memref<1x1x256xf32, #tpu.memory_space<vmem>>, vector<1x1x256xf32>,
    } else {
    }
    return
  }
  func.func @transform_0(%arg0: i32, %arg1: i32) -> i32 {
    %c0_i32 = arith.constant 0 : i32
    %c0_i32_0 = arith.constant 0 : i32
    return %c0_i32 : i32
  }
  func.func @transform_1(%arg0: i32, %arg1: i32) -> i32 {
    %c0_i32 = arith.constant 0 : i32
    %c0_i32_0 = arith.constant 0 : i32
    return %c0_i32 : i32
  }
  func.func @transform_2(%arg0: i32, %arg1: i32) -> (i32, i32, i32) {
    %c0_i32 = arith.constant 0 : i32
    %c0_i32_0 = arith.constant 0 : i32
    return %arg0, %arg1, %c0_i32 : i32, i32, i32
  }
  func.func @transform_3(%arg0: i32, %arg1: i32) -> (i32, i32, i32) {
    %c0_i32 = arith.constant 0 : i32
    %c0_i32_0 = arith.constant 0 : i32
    %c0_i32_1 = arith.constant 0 : i32
    return %arg0, %c0_i32, %c0_i32_0 : i32, i32, i32
  }
}

</mosaic_0001>

<bundles_post_ra>
// kernel: tpu_custom_call.1
= control target key start
LH: loop header
LB: loop body
LE: loop exit
PB: predicated region body
PF: predicated region fallthrough
CT: control target
= control target key end

     0   :  { %s1415_s0 = inlined_call_operand.vmem [shape: f32[18], index: 0, kind: input, shape index: {}]   ;;  %s1416_s1 = inlined_call_operand.<no memory space> [shape: f32[1], index: 1, kind: input, shape index: {}]   ;;  %s1417_s2 = inlined_call_operand.hbm [shape: f32[2,4,256], index: 2, kind: input, shape index: {}]   ;;  %s1418_s3 = inlined_call_operand.hbm [shape: f32[2,1,256], index: 3, kind: output, shape index: {}]  }
   0x1   :  { %8 = sst [smem:[#allocation4]] %s1416_s1 }
   0x2   :  { %9 = vsyncpa [#allocation8], 0 }
   0x3   :  { %10 = vsyncpa [#allocation6], 0 }
   0x4   :  { %12 = vsyncpa [#allocation6 + $0x1], 0 }
   0x5   :  { %13 = vsyncpa [#allocation7], 0 }
   0x6   :  { %15 = vsyncpa [#allocation7 + $0x1], 0  ;;  %s977_s14 = smov 0   ;;  %s979_s15 = smov 0  }
   0x7   :  { %s981_s16 = smov 0   ;;  %s983_s17 = smov 0  }
   0x8   :  { %s985_s18 = smov 0   ;;  %s987_s19 = smov 0  }
   0x9 LB: > { %s680_s1 = sadd.s32 4294967295, %s938_s19   ;;  %s681_s20 = sadd.s32 4294967294, %s938_s19   ;;  %s938_s19 = sphi %s987_s19, %s21_s19   ;;  %s934_s18 = sphi %s985_s18, %s1451_s18   ;;  %s930_s17 = sphi %s983_s17, %s1450_s17   ;;  %s926_s16 = sphi %s981_s16, %s1449_s16   ;;  %s922_s15 = sphi %s979_s15, %s1448_s15   ;;  %s918_s14 = sphi %s977_s14, %s1447_s14  }
   0xa   : > { %p97_p0 = scmp.ne.s32.totalorder %s922_s15, %s918_s14  ;;  %p1011_p1 = scmp.eq.s32.totalorder %s680_s1, 0 }
   0xb   : > { %p1015_p2 = scmp.eq.s32.totalorder %s680_s1, 1  ;;  %p127_p3 = scmp.eq.s32.totalorder %s681_s20, 1 }
   0xc   : > { %p1021_p4 = por %p1011_p1, %p97_p0  ;;  %p682_p5 = scmp.ge.s32.totalorder %s938_s19, 1 }
   0xd   : > { %p1026_p6 = por %p127_p3, %p97_p0  ;;  %p134_p7 = scmp.lt.s32.totalorder %s938_s19, 3 }
   0xe   : > { %s1422_s23 = scalar_select %p1021_p4, 1, 0 }
   0xf   : > { %s1423_s24 = scalar_select %p1026_p6, 1, 0 }
  0x10   : > { %s147_s27 = sshll.u32 %s1415_s0, 4  ;;  %p1034_p8 = pnand %p682_p5, %p134_p7  ;;  %s148_s27 = int_to_ptr.vmem [resolvable:$true] %s147_s27 }
  0x11   : > { %s33_s30 = sadd.s32 1, %s934_s18  ;;  %s84_s4 = sadd.s32 1, %s926_s16 }
  0x12   : > { %p726_p10 = pneg %p1034_p8  ;;  %p35_p12 = scmp.ge.s32.totalorder %s33_s30, 2 }
  0x13   : > { %s811_s5 = scalar_lea.vmem %s148_s27, 16  ;;  %p819_p7 = scmp.lt.s32.totalorder %s148_s27, %s148_s27 }
  0x14   : > { %p1043_p11 = pnand %p726_p10, %p1011_p1  ;;  %p812_p13 = scmp.ne.s32.totalorder %s148_s27, %s811_s5 }
  0x15   : > { %p820_p6 = scmp.lt.s32.totalorder %s811_s5, %s811_s5 }
  0x16   : > { %p813_p0 = pneg %p1043_p11 }
  0x17   : > { %p821_p9 = por %p820_p6, %p819_p7 }
  0x18   : > { %p814_p3 = pnand %p813_p0, %p812_p13 }
  0x1a   : > { %p815_p5 = pneg %p814_p3 }
  0x1c   : > { %p822_p4 = pnand %p821_p9, %p815_p5 }
  0x1e   : > { %825 = shalt.err (!%p822_p4)
}
  0x1f   : > { %s940_s6 = smov [#allocation5]   ;;  %s1453_s30 = smov (%p35_p12, %s33_s30), 0 }
  0x20   : > { %729 = dma.vmem_to_smem (!%p1043_p11), %s148_s27, 16, %s940_s6, [#allocation8]  }
  0x21   : > { %p91_p10 = scmp.ne.s32.totalorder %s926_s16, %s922_s15  ;;  %p92_p6 = scmp.eq.s32.totalorder %s938_s19, 0 }
  0x22   : > { %s79_s7 = ssub.s32 %s934_s18, %s1453_s30  ;;  %p739_p4 = scmp.lt.s32.totalorder %s938_s19, 2 }
  0x23   : > { %p82_p9 = scmp.eq.s32.totalorder %s79_s7, 0  ;;  %p93_p13 = por %p92_p6, %p91_p10 }
  0x24   : > { %p1063_p0 = por %p1015_p2, %p91_p10  ;;  %s161_s9 = sand.u32 1, %s926_s16  }
  0x25   : > { %s1069_s10 = scalar_select %p82_p9, %s926_s16, %s84_s4  }
  0x26   : > { %s685_s11 = sshll.u32 %s161_s9, 3  ;;  %s716_s12 = sshll.u32 %s934_s18, 7 }
  0x27   : > { %s173_s20 = scalar_lea.hbm %s1417_s2, %s716_s12  ;;  %s165_s25 = scalar_lea.vmem [#allocation9], %s685_s11 }
  0x28   : > { %s175_s26 = sshll.u32 %s165_s25, 4  ;;  %p1075_p11 = pnand %p739_p4, %p93_p13  ;;  %s176_s26 = int_to_ptr.vmem [resolvable:$true] %s175_s26 }
  0x29   : > { %s162_s22 = scalar_lea.sflag [#allocation6], %s161_s9  ;;  %s839_s29 = scalar_lea.vmem %s176_s26, 128 }
  0x2a   : > { %p828_p2 = pneg %p1075_p11  ;;  %p840_p12 = scmp.ne.s32.totalorder %s176_s26, %s839_s29 }
  0x2b   : > { %s941_s4 = smov [#allocation9]  }
  0x2c   : > { %p842_p3 = pnand %p840_p12, %p828_p2  ;;  %s844_s5 = sshll.u32 %s941_s4, 4  ;;  %s845_s5 = int_to_ptr.vmem [resolvable:$false] %s844_s5 }
  0x2d   : > { %s846_s6 = scalar_lea.vmem %s845_s5, 256  ;;  %p847_p7 = scmp.lt.s32.totalorder %s176_s26, %s845_s5 }
  0x2e   : > { %p843_p5 = pneg %p842_p3  ;;  %p848_p10 = scmp.lt.s32.totalorder %s846_s6, %s839_s29 }
  0x30   : > { %p849_p6 = por %p848_p10, %p847_p7 }
  0x32   : > { %p850_p9 = pnand %p849_p6, %p843_p5 }
  0x34   : > { %853 = shalt.err (!%p850_p9)
}
  0x35   : > { %733 = dma.hbm_to_vmem [thread:$0]  (!%p1075_p11), %s173_s20, 128, %s176_s26, %s162_s22  }
  0x36   : > { %184 = sbr.rel (%p1034_p8) target bundleno = 305 (0x131), region = 32 }
  0x3b   : > { %905 = dma.done.wait (%p1011_p1), [#allocation8], 16  }
  0x3c   : > { %907 = vsyncadd (%p1011_p1), [#allocation8], 4294967280  ;;  %s1090_s7 = sand.u32 1, %s922_s15   ;;  %p1428_p4 = scmp.ne.s32.totalorder %s1422_s23, 0 }
  0x3d   : > { %s690_s9 = sshll.u32 %s1090_s7, 3  ;;  %s191_s11 = scalar_lea.sflag [#allocation6], %s1090_s7 }
  0x3e   : > { %s194_s12 = scalar_lea.vmem [#allocation9], %s690_s9 }
  0x3f   : > { %909 = dma.done.wait (%p1428_p4), %s191_s11, 128  }
  0x40   : > { %911 = vsyncadd (%p1428_p4), %s191_s11, 4294967168 }
  0x41   : > { %199 = sfence }
  0x42   : > { %v942_v0 = vmov -inf   ;;  %v943_v1 = vmov 0.0   ;;  %v226_v2 = vld [vmem:[%s194_s12] sm:$0xff]  ;;  %vm275_vm0 = vcmask 1040384   ;;  %s944_s21 = smov 16   ;;  %s945_s23 = smov 17   ;;  %v278_v44 = vlaneseq }
  0x43   : > { %222 = vst [vmem:[#allocation2] sm:$0xff] %v942_v0  ;;  %224 = vst [vmem:[#allocation3 + $0x8] sm:$0xff] %v943_v1  ;;  %v230_v3 = vcombine.high %v226_v2, %v226_v2  ;;  %s946_s28 = smov 15   ;;  %s947_s13 = smov 1  }
  0x44   : > { %223 = vst [vmem:[#allocation2 + $0x8] sm:$0xff] %v942_v0  ;;  %225 = vst [vmem:[#allocation3] sm:$0xff] %v943_v1  ;;  %s948_s1 = smov 127   ;;  %s949_s20 = smov 113   ;;  %v1131_v45 = vand.u32 127, %v278_v44 }
  0x45   : > { %s950_s25 = smov 112   ;;  %s951_s26 = smov 111  }
  0x46   : > { %s1118_s27 = sld [smem:[#allocation5 + $0x1]]  ;;  %v1138_v46 = vadd.s32 128, %v1131_v45  ;;  %v283_v47 = vshra.s32 %v1131_v45, 4  ;;  %v281_v49 = vand.u32 15, %v1131_v45  ;;  %vm326_vm1 = vcmp.lt.s32.totalorder %v1131_v45, 16 }
  0x47   : > { %s1120_s22 = sld [smem:[#allocation5 + $0xa]]  ;;  %vm293_vm3 = vcmp.lt.s32.totalorder %v1131_v45, 17  ;;  %vm353_vm7 = vcmp.lt.s32.totalorder %v1131_v45, 15  ;;  %vm384_vm10 = vcmp.lt.s32.totalorder %v1131_v45, 1  ;;  %vm429_vm11 = vcmp.lt.s32.totalorder %v1131_v45, 127 }
  0x48   : > { %s1122_s29 = sld [smem:[#allocation5]]  ;;  %v284_v48 = vshra.s32 %v1138_v46, 4  ;;  %v282_v50 = vand.u32 15, %v1138_v46  ;;  %vm1158_vm2 = vcmp.ge.s32.totalorder %v283_v47, 1  ;;  %vm1174_vm5 = vcmp.ge.s32.totalorder %v281_v49, 1 }
  0x49   : > { %s1124_s4 = sld [smem:[#allocation5 + $0x9]]  ;;  %vm1190_vm8 = vcmp.lt.s32.totalorder %v281_v49, 15  ;;  %vm314_vm12 = vmand %vm1158_vm2, %vm1174_vm5  ;;  %vm456_vm14 = vcmp.lt.s32.totalorder %v1131_v45, 113 }
  0x4a   : > { %v227_v4 = vld [vmem:[#allocation2] sm:$0xf]  ;;  %v236_v5 = vld [vmem:[#allocation3 + $0x8] sm:$0xf]  ;;  %s1126_s5 = sld [smem:[#allocation5 + $0x2]]  ;;  %vm1167_vm4 = vcmp.ge.s32.totalorder %v284_v48, 1  ;;  %vm372_vm15 = vmand %vm1158_vm2, %vm1190_vm8 }
  0x4b   : > { %v228_v6 = vld [vmem:[#allocation2 + $0x8] sm:$0xf]  ;;  %v232_v7 = vmax.f32 %v227_v4, %v226_v2  ;;  %v238_v8 = vadd.f32 %v236_v5, %v226_v2  ;;  %v237_v10 = vld [vmem:[#allocation3] sm:$0xf]  ;;  %s1128_s6 = sld [smem:[#allocation5 + $0xd]]  ;;  %vm1178_vm6 = vcmp.ge.s32.totalorder %v282_v50, 1 }
  0x4c   : > { %v233_v9 = vmax.f32 %v228_v6, %v230_v3  ;;  %v239_v11 = vadd.f32 %v237_v10, %v230_v3  ;;  %s1133_s9 = sld [smem:[#allocation5 + $0xb]]  ;;  %v329_v53 = vstv %s1118_s27  ;;  %vm1194_vm9 = vcmp.lt.s32.totalorder %v282_v50, 15  ;;  %vm315_vm13 = vmand %vm1167_vm4, %vm1178_vm6 }
  0x4d   : > { %234 = vst [vmem:[#allocation2] sm:$0xf] %v232_v7  ;;  %240 = vst [vmem:[#allocation3 + $0x8] sm:$0xf] %v238_v8  ;;  %s1135_s11 = sld [smem:[#allocation4]]  ;;  %v332_v54 = vstv %s1120_s22 }
  0x4e   : > { %235 = vst [vmem:[#allocation2 + $0x8] sm:$0xf] %v233_v9  ;;  %241 = vst [vmem:[#allocation3] sm:$0xf] %v239_v11  ;;  %s1140_s12 = sld [smem:[#allocation5 + $0x3]]  ;;  %v296_v58 = vstv %s1122_s29  ;;  %s691_s29 = sshll.u32 %s1090_s7, 1 }
  0x4f   : > { %v299_v59 = vstv %s1124_s4  ;;  %s1286_s27 = sld [smem:[#allocation5 + $0x8]]  ;;  %s717_s4 = sshll.u32 %s930_s17, 5 }
  0x50   : > { %v356_v1 = vstv %s1126_s5  ;;  %s1299_s22 = sld [smem:[#allocation5 + $0x11]]  ;;  %s217_s5 = scalar_lea.vmem [#allocation10], %s691_s29 }
  0x51   : > { %v410_v51 = vstv %s1128_s6  ;;  %s587_s6 = sshll.u32 %s217_s5, 4  ;;  %s588_s6 = int_to_ptr.vmem [resolvable:$true] %s587_s6 }
  0x52   : > { %v359_v2 = vstv %s1133_s9 }
  0x53   : > { %v286_v0 = vstv %s1135_s11 }
  0x54   : > { %v245_v12 = vld [vmem:[#allocation2] sm:$0xff]  ;;  %v259_v13 = vld [vmem:[#allocation3 + $0x8] sm:$0xff]  ;;  %v387_v6 = vstv %s1140_s12  ;;  %s585_s12 = scalar_lea.hbm %s1418_s3, %s717_s4 }
  0x55   : > { %v246_v14 = vld [vmem:[#allocation2 + $0x8] sm:$0xff]  ;;  %v247_v15 = vrot.slane %v245_v12, 4  ;;  %v261_v16 = vrot.slane %v259_v13, 4  ;;  %v260_v18 = vld [vmem:[#allocation3] sm:$0xff] }
  0x56   : > { %v253_v17 = vrot.slane %v246_v14, 4  ;;  %v267_v19 = vrot.slane %v260_v18, 4 }
  0x57   : > { %v248_v20 = vmax.f32 %v245_v12, %v247_v15  ;;  %v262_v21 = vadd.f32 %v261_v16, %v259_v13 }
  0x58   : > { %v254_v22 = vmax.f32 %v246_v14, %v253_v17  ;;  %v268_v23 = vadd.f32 %v267_v19, %v260_v18 }
  0x59   : > { %v249_v24 = vrot.slane %v248_v20, 2  ;;  %v263_v25 = vrot.slane %v262_v21, 2 }
  0x5a   : > { %v255_v26 = vrot.slane %v254_v22, 2  ;;  %v269_v27 = vrot.slane %v268_v23, 2 }
  0x5b   : > { %v250_v28 = vmax.f32 %v248_v20, %v249_v24  ;;  %v264_v29 = vadd.f32 %v263_v25, %v262_v21 }
  0x5c   : > { %v256_v30 = vmax.f32 %v254_v22, %v255_v26  ;;  %v270_v31 = vadd.f32 %v269_v27, %v268_v23 }
  0x5d   : > { %v251_v32 = vrot.slane %v250_v28, 1  ;;  %v265_v33 = vrot.slane %v264_v29, 1 }
  0x5e   : > { %v257_v34 = vrot.slane %v256_v30, 1  ;;  %v271_v35 = vrot.slane %v270_v31, 1 }
  0x5f   : > { %v252_v36 = vmax.f32 %v250_v28, %v251_v32  ;;  %v266_v37 = vadd.f32 %v265_v33, %v264_v29 }
  0x60   : > { %v272_v38 = vadd.f32 %v271_v35, %v270_v31  ;;  %v258_v40 = vmax.f32 %v256_v30, %v257_v34 }
  0x61   : > { %v273_v39 = vmul.f32 0.25, %v266_v37 }
  0x62   : > { %v274_v41 = vmul.f32 0.25, %v272_v38 }
  0x63   : > { %v1098_v42 = vsel %vm275_vm0, %v252_v36, %v273_v39 }
  0x64   : > { %322 = vrot.lane.b32.xlu1 %v1098_v42, %s944_s21  ;;  %289 = vrot.lane.b32.xlu0 %v1098_v42, %s945_s23  ;;  %v1102_v43 = vsel %vm275_vm0, %v258_v40, %v274_v41  ;;  %v411_v3 = vmul.f32 %v410_v51, %v1098_v42  ;;  %vm373_vm0 = vmand %vm1167_vm4, %vm1194_vm9 }
  0x65   : > { %v412_v60 = vmul.f32 %v410_v51, %v1102_v43 }
  0x66   : > { %v415_v21 = vrot.slane %v411_v3, 1 }
  0x67   : > { %v416_v11 = vrot.slane %v412_v60, 1 }
  0x68   : > { %324 = vrot.lane.b32.xlu1 %v1102_v43, %s944_s21  ;;  %291 = vrot.lane.b32.xlu0 %v1102_v43, %s945_s23  ;;  %s1142_s21 = sld [smem:[#allocation5 + $0x4]] }
  0x69   : > { %s1144_s23 = sld [smem:[#allocation5 + $0xc]] }
  0x6c   : > { %351 = vrot.lane.b32.xlu1 %v1102_v43, %s946_s28  ;;  %349 = vrot.lane.b32.xlu0 %v1098_v42, %s946_s28  ;;  %s1147_s28 = sld [smem:[#allocation5 + $0x5]] }
  0x6e   : > { %v407_v63 = vstv %s1142_s21  ;;  %s573_s21 = scalar_lea.sflag [#allocation7], %s1090_s7 }
  0x6f   : > { %v390_v7 = vstv %s1144_s23  ;;  %v409_v10 = vmul.f32 %v407_v63, %v1102_v43  ;;  %v408_v20 = vmul.f32 %v407_v63, %v1098_v42  ;;  %s854_s23 = scalar_lea.vmem %s588_s6, 32 }
  0x70   : > { %382 = vrot.lane.b32.xlu1 %v1102_v43, %s947_s13  ;;  %380 = vrot.lane.b32.xlu0 %v1098_v42, %s947_s13  ;;  %s1150_s13 = sld [smem:[#allocation5 + $0xe]]  ;;  %p855_p1 = scmp.ne.s32.totalorder %s588_s6, %s854_s23 }
  0x71   : > { %v1228_v38 = vadd.f32 %v416_v11, %v409_v10 }
  0x72   : > { %v432_v12 = vstv %s1147_s28  ;;  %p856_p8 = pnand %p855_p1, %p1063_p0  ;;  %s953_s28 = smov [#allocation10]  }
  0x73   : > { %s858_s17 = sshll.u32 %s953_s28, 4  ;;  %s859_s17 = int_to_ptr.vmem [resolvable:$false] %s858_s17 }
  0x74   : > { %427 = vrot.lane.b32.xlu1 %v1102_v43, %s948_s1  ;;  %425 = vrot.lane.b32.xlu0 %v1098_v42, %s948_s1  ;;  %s1188_s1 = sld [smem:[#allocation5 + $0x6]]  ;;  %p857_p13 = pneg %p856_p8 }
  0x75   : > { %p861_p11 = scmp.lt.s32.totalorder %s588_s6, %s859_s17 }
  0x76   : > { %v435_v13 = vstv %s1150_s13  ;;  %s860_s13 = scalar_lea.vmem %s859_s17, 64 }
  0x77   : > { %p862_p2 = scmp.lt.s32.totalorder %s860_s13, %s854_s23 }
  0x78   : > { %454 = vrot.lane.b32.xlu1 %v1102_v43, %s949_s20  ;;  %452 = vrot.lane.b32.xlu0 %v1098_v42, %s949_s20  ;;  %s1204_s20 = sld [smem:[#allocation5 + $0xf]] }
  0x79   : > { %p863_p12 = por %p862_p2, %p861_p11 }
  0x7a   : > { %v459_v39 = vstv %s1188_s1 }
  0x7b   : > { %p864_p3 = pnand %p863_p12, %p857_p13 }
  0x7c   : > { %485 = vrot.lane.b32.xlu1 %v1102_v43, %s950_s25  ;;  %483 = vrot.lane.b32.xlu0 %v1098_v42, %s950_s25  ;;  %s1256_s25 = sld [smem:[#allocation5 + $0x7]] }
  0x80   : > { %512 = vrot.lane.b32.xlu1 %v1102_v43, %s951_s26  ;;  %510 = vrot.lane.b32.xlu0 %v1098_v42, %s951_s26  ;;  %s1266_s26 = sld [smem:[#allocation5 + $0x10]] }
  0xd6   : > { %v323_v55 = vpop.permute.xlu1 %322  ;;  %v290_v56 = vpop.permute.xlu0 %289 }
  0xda   : > { %v325_v8 = vpop.permute.xlu1 %324  ;;  %v292_v9 = vpop.permute.xlu0 %291 }
  0xdb   : > { %v327_v14 = vsel %vm326_vm1, %v323_v55, %v325_v8  ;;  %v328_v15 = vsel %vm326_vm1, %v325_v8, %v323_v55  ;;  %v294_v16 = vsel %vm293_vm3, %v290_v56, %v292_v9  ;;  %v295_v17 = vsel %vm293_vm3, %v292_v9, %v290_v56 }
  0xdc   : > { %v333_v18 = vmul.f32 %v332_v54, %v328_v15  ;;  %v334_v19 = vmul.f32 %v332_v54, %v327_v14  ;;  %v330_v22 = vmul.f32 %v329_v53, %v328_v15  ;;  %v331_v23 = vmul.f32 %v329_v53, %v327_v14 }
  0xdd   : > { %v300_v24 = vmul.f32 %v299_v59, %v295_v17  ;;  %v301_v25 = vmul.f32 %v299_v59, %v294_v16  ;;  %v297_v28 = vmul.f32 %v296_v58, %v295_v17  ;;  %v298_v29 = vmul.f32 %v296_v58, %v294_v16 }
  0xde   : > { %v337_v26 = vrot.slane %v333_v18, 1  ;;  %v338_v27 = vrot.slane %v334_v19, 1  ;;  %v352_v30 = vpop.permute.xlu1 %351  ;;  %v350_v31 = vpop.permute.xlu0 %349  ;;  %v1232_v54 = vadd.f32 %v415_v21, %v408_v20  ;;  %v462_v55 = vstv %s1204_s20 }
  0xdf   : > { %v304_v32 = vrot.slane %v300_v24, 1  ;;  %v305_v33 = vrot.slane %v301_v25, 1  ;;  %v354_v34 = vsel %vm353_vm7, %v350_v31, %v352_v30  ;;  %v355_v35 = vsel %vm353_vm7, %v352_v30, %v350_v31 }
  0xe0   : > { %v341_v36 = vadd.f32 %v337_v26, %v330_v22  ;;  %v342_v37 = vadd.f32 %v338_v27, %v331_v23  ;;  %v360_v42 = vmul.f32 %v359_v2, %v355_v35  ;;  %v361_v43 = vmul.f32 %v359_v2, %v354_v34 }
  0xe1   : > { %v308_v40 = vadd.f32 %v304_v32, %v297_v28  ;;  %v309_v41 = vadd.f32 %v305_v33, %v298_v29  ;;  %v357_v49 = vmul.f32 %v356_v1, %v355_v35  ;;  %v358_v50 = vmul.f32 %v356_v1, %v354_v34 }
  0xe2   : > { %v383_v51 = vpop.permute.xlu1 %382  ;;  %v381_v53 = vpop.permute.xlu0 %380  ;;  %v364_v59 = vrot.slane %v360_v42, 1  ;;  %v365_v60 = vrot.slane %v361_v43, 1  ;;  %v343_v8 = vsel %vm1158_vm2, %v341_v36, 0.0  ;;  %vm1294_vm1 = vcmp.lt.s32.totalorder %v283_v47, 15 }
  0xe3   : > { %v316_v56 = vsel %vm314_vm12, %v308_v40, 0.0  ;;  %v317_v58 = vsel %vm315_vm13, %v309_v41, 0.0  ;;  %v385_v2 = vsel %vm384_vm10, %v381_v53, %v383_v51  ;;  %v386_v3 = vsel %vm384_vm10, %v383_v51, %v381_v53  ;;  %vm475_vm7 = vmand %vm1294_vm1, %vm1174_vm5 }
  0xe4   : > { %v318_v63 = vadd.f32 %v316_v56, %v286_v0  ;;  %v319_v1 = vadd.f32 %v317_v58, %v286_v0  ;;  %v344_v0 = vsel %vm1167_vm4, %v342_v37, 0.0  ;;  %v368_v9 = vadd.f32 %v364_v59, %v357_v49 }
  0xe5   : > { %v369_v10 = vadd.f32 %v365_v60, %v358_v50  ;;  %v391_v15 = vmul.f32 %v390_v7, %v386_v3  ;;  %v392_v16 = vmul.f32 %v390_v7, %v385_v2  ;;  %v388_v22 = vmul.f32 %v387_v6, %v386_v3 }
  0xe6   : > { %v345_v11 = vadd.f32 %v343_v8, %v318_v63  ;;  %v346_v14 = vadd.f32 %v344_v0, %v319_v1  ;;  %v428_v17 = vpop.permute.xlu1 %427  ;;  %v426_v18 = vpop.permute.xlu0 %425  ;;  %v374_v19 = vsel %vm372_vm15, %v368_v9, 0.0  ;;  %v389_v52 = vmul.f32 %v387_v6, %v385_v2 }
  0xe7   : > { %v375_v20 = vsel %vm373_vm0, %v369_v10, 0.0  ;;  %v430_v21 = vsel %vm429_vm11, %v426_v18, %v428_v17  ;;  %v431_v7 = vsel %vm429_vm11, %v428_v17, %v426_v18  ;;  %v395_v23 = vrot.slane %v391_v15, 1 }
  0xe8   : > { %v396_v24 = vrot.slane %v392_v16, 1  ;;  %v436_v57 = vmul.f32 %v435_v13, %v430_v21  ;;  %v437_v25 = vmul.f32 %v435_v13, %v431_v7  ;;  %vm487_vm2 = vcmp.lt.s32.totalorder %v1131_v45, 112 }
  0xe9   : > { %v376_v6 = vadd.f32 %v374_v19, %v345_v11  ;;  %v377_v27 = vadd.f32 %v375_v20, %v346_v14  ;;  %v399_v28 = vadd.f32 %v395_v23, %v388_v22  ;;  %vm1311_vm3 = vcmp.lt.s32.totalorder %v284_v48, 15 }
  0xea   : > { %v400_v29 = vadd.f32 %v396_v24, %v389_v52  ;;  %v455_v30 = vpop.permute.xlu1 %454  ;;  %v453_v31 = vpop.permute.xlu0 %452  ;;  %v440_v13 = vrot.slane %v436_v57, 1  ;;  %v441_v32 = vrot.slane %v437_v25, 1  ;;  %v490_v37 = vstv %s1256_s25  ;;  %vm476_vm10 = vmand %vm1311_vm3, %vm1178_vm6 }
  0xeb   : > { %v457_v47 = vsel %vm456_vm14, %v453_v31, %v455_v30  ;;  %v458_v33 = vsel %vm456_vm14, %v455_v30, %v453_v31  ;;  %v401_v34 = vsel %vm1174_vm5, %v399_v28, 0.0  ;;  %v433_v42 = vmul.f32 %v432_v12, %v430_v21  ;;  %vm531_vm5 = vmand %vm1294_vm1, %vm1190_vm8 }
  0xec   : > { %v402_v35 = vsel %vm1178_vm6, %v400_v29, 0.0  ;;  %v403_v40 = vadd.f32 %v401_v34, %v376_v6  ;;  %v434_v43 = vmul.f32 %v432_v12, %v431_v7  ;;  %v463_v49 = vmul.f32 %v462_v55, %v457_v47  ;;  %vm532_vm6 = vmand %vm1311_vm3, %vm1194_vm9 }
  0xed   : > { %v404_v41 = vadd.f32 %v402_v35, %v377_v27  ;;  %v464_v50 = vmul.f32 %v462_v55, %v458_v33  ;;  %v493_v53 = vstv %s1266_s26  ;;  %vm514_vm4 = vcmp.lt.s32.totalorder %v1131_v45, 111 }
  0xee   : > { %v486_v51 = vpop.permute.xlu1 %485  ;;  %v484_v56 = vpop.permute.xlu0 %483  ;;  %v444_v46 = vadd.f32 %v440_v13, %v433_v42  ;;  %v445_v48 = vadd.f32 %v441_v32, %v434_v43  ;;  %v460_v58 = vmul.f32 %v459_v39, %v457_v47  ;;  %v461_v59 = vmul.f32 %v459_v39, %v458_v33 }
  0xef   : > { %v467_v60 = vrot.slane %v463_v49, 1  ;;  %v468_v63 = vrot.slane %v464_v50, 1  ;;  %v488_v12 = vsel %vm487_vm2, %v484_v56, %v486_v51  ;;  %v489_v55 = vsel %vm487_vm2, %v486_v51, %v484_v56 }
  0xf0   : > { %v422_v1 = vadd.f32 %v1228_v38, %v404_v41  ;;  %v421_v2 = vadd.f32 %v1232_v54, %v403_v40  ;;  %v517_v3 = vstv %s1286_s27  ;;  %v520_v8 = vstv %s1299_s22 }
  0xf1   : > { %v471_v39 = vadd.f32 %v467_v60, %v460_v58  ;;  %v472_v0 = vadd.f32 %v468_v63, %v461_v59  ;;  %v494_v9 = vmul.f32 %v493_v53, %v488_v12  ;;  %v495_v10 = vmul.f32 %v493_v53, %v489_v55 }
  0xf2   : > { %v513_v11 = vpop.permute.xlu1 %512  ;;  %v511_v38 = vpop.permute.xlu0 %510  ;;  %v446_v54 = vsel %vm1190_vm8, %v444_v46, 0.0  ;;  %v447_v14 = vsel %vm1194_vm9, %v445_v48, 0.0  ;;  %v491_v17 = vmul.f32 %v490_v37, %v488_v12  ;;  %v492_v18 = vmul.f32 %v490_v37, %v489_v55 }
  0xf3   : > { %v515_v15 = vsel %vm514_vm4, %v511_v38, %v513_v11  ;;  %v516_v16 = vsel %vm514_vm4, %v513_v11, %v511_v38  ;;  %v498_v19 = vrot.slane %v494_v9, 1  ;;  %v499_v20 = vrot.slane %v495_v10, 1 }
  0xf4   : > { %v477_v21 = vsel %vm475_vm7, %v471_v39, 0.0  ;;  %v478_v7 = vsel %vm476_vm10, %v472_v0, 0.0  ;;  %v521_v45 = vmul.f32 %v520_v8, %v515_v15  ;;  %v522_v23 = vmul.f32 %v520_v8, %v516_v16 }
  0xf5   : > { %v502_v22 = vadd.f32 %v498_v19, %v491_v17  ;;  %v503_v52 = vadd.f32 %v499_v20, %v492_v18  ;;  %v448_v24 = vadd.f32 %v446_v54, %v421_v2  ;;  %v449_v57 = vadd.f32 %v447_v14, %v422_v1 }
  0xf6   : > { %v518_v25 = vmul.f32 %v517_v3, %v515_v15  ;;  %v519_v6 = vmul.f32 %v517_v3, %v516_v16  ;;  %v525_v62 = vrot.slane %v521_v45, 1  ;;  %v526_v28 = vrot.slane %v522_v23, 1 }
  0xf7   : > { %v504_v27 = vsel %vm1294_vm1, %v502_v22, 0.0  ;;  %v505_v61 = vsel %vm1311_vm3, %v503_v52, 0.0  ;;  %v479_v29 = vadd.f32 %v477_v21, %v448_v24  ;;  %v480_v30 = vadd.f32 %v478_v7, %v449_v57 }
  0xf8   : > { %v529_v31 = vadd.f32 %v525_v62, %v518_v25  ;;  %v530_v13 = vadd.f32 %v526_v28, %v519_v6  ;;  %v952_v36 = vmov 1966171168   ;;  %v556_v50 = vshrl.u32 %v278_v44, 7 }
  0xf9   : > { %v506_v32 = vadd.f32 %v504_v27, %v479_v29  ;;  %v507_v47 = vadd.f32 %v505_v61, %v480_v30  ;;  %v553_v43 = vunpack.c.l.s4 %v952_v36  ;;  %vm569_vm8 = vcmp.lt.s32.totalorder %v278_v44, 256 }
  0xfa   : > { %v533_v33 = vsel %vm531_vm5, %v529_v31, 0.0  ;;  %v534_v34 = vsel %vm532_vm6, %v530_v13, 0.0 }
  0xfb   : > { %v535_v35 = vadd.f32 %v533_v33, %v506_v32  ;;  %v536_v4 = vadd.f32 %v534_v34, %v507_v47  ;;  %v554_v49 = vunpack.c.0.s8 %v553_v43 }
  0xfd   : > { %v709_v26 = vmul.f32 -1.442695, %v535_v35  ;;  %v710_v37 = vmul.f32 -1.442695, %v536_v4  ;;  %v557_v53 = vsub.s32 %v554_v49, %v556_v50 }
  0xff   : > { %803 = vpow2.f32 %v709_v26 }
 0x100   : > { %805 = vpow2.f32 %v710_v37 }
 0x10c   : > { %v804_v40 = vpop.eup %803 }
 0x10d   : > { %v806_v41 = vpop.eup %805  ;;  %v543_v5 = vadd.f32 1.0, %v804_v40 }
 0x10e   : > { %v544_v42 = vadd.f32 1.0, %v806_v41 }
 0x10f   : > { %807 = vrcp.f32 %v543_v5 }
 0x110   : > { %809 = vrcp.f32 %v544_v42 }
 0x11c   : > { %v808_v51 = vpop.eup %807 }
 0x11d   : > { %v810_v56 = vpop.eup %809 }
 0x11e   : > { %v551_v46 = vcombine.low %v808_v51, %v810_v56 }
 0x120   : > { %v558_v48 = vrot.slane %v551_v46, %v557_v53 }
 0x122   : > { %v565_v58 = vrot.slane %v558_v48, %v557_v53 }
 0x124   : > { %571 = vst.msk [vmem:[%s217_s5] sm:$0x3] %vm569_vm8, %v565_v58 }
 0x125   : > { %867 = shalt.err (!%p864_p3)
}
 0x126   : > { %s868_s1 = scalar_lea.hbm %s585_s12, 32  ;;  %s872_s25 = scalar_lea.hbm %s1418_s3, 64 }
 0x127   : > { %p869_p5 = scmp.ne.s32.totalorder %s585_s12, %s868_s1  ;;  %p873_p6 = scmp.lt.s32.totalorder %s585_s12, %s1418_s3 }
 0x128   : > { %p874_p9 = scmp.lt.s32.totalorder %s872_s25, %s868_s1 }
 0x129   : > { %p870_p7 = pnand %p869_p5, %p1063_p0 }
 0x12a   : > { %p875_p4 = por %p874_p9, %p873_p6 }
 0x12b   : > { %p871_p10 = pneg %p870_p7 }
 0x12d   : > { %p876_p1 = pnand %p875_p4, %p871_p10 }
 0x12f   : > { %879 = shalt.err (!%p876_p1)
}
 0x130   : > { %724 = dma.vmem_to_hbm [thread:$0]  (%p1063_p0), %s588_s6, 32, %s585_s12, %s573_s21  }
 0x131 PF: > { %s599_s22 = sand.u32 1, %s918_s14   ;;  %p1445_p8 = scmp.ne.s32.totalorder %s1423_s24, 0 }
 0x132   : > { %p1446_p13 = scmp.ge.s32.totalorder %s938_s19, 2  ;;  %s600_s29 = scalar_lea.sflag [#allocation7], %s599_s22 }
 0x134   : > { %p735_p11 = pnand %p1446_p13, %p1445_p8 }
 0x136   : > { %p736_p2 = pneg %p735_p11 }
 0x138   : > { %913 = dma.done.wait (%p736_p2), %s600_s29, 32  }
 0x139   : > { %915 = vsyncadd (%p736_p2), %s600_s29, 4294967264  ;;  %s21_s19 = sadd.s32 1, %s938_s19   ;;  %s1447_s14 = smov %s922_s15 }
 0x13a   : > { %p18_p12 = scmp.ge.s32.totalorder %s21_s19, 4   ;;  %s1448_s15 = smov %s926_s16 }
 0x13b   : > { %s1449_s16 = smov %s1069_s10  ;;  %s1450_s17 = smov %s934_s18 }
 0x13c   : > { %s1451_s18 = smov %s1453_s30  ;;  %20 = sbr.rel (!%p18_p12) target bundleno = 9 (0x9), region = 90 }
 0x141   :  { %605 = vsyncpa [#allocation6], 1 }
 0x142   :  { %607 = vsyncpa [#allocation6 + $0x1], 1 }
 0x143   :  { %608 = vsyncpa [#allocation7], 1 }
 0x144   :  { %610 = vsyncpa [#allocation7 + $0x1], 1 }
 0x145   :  { %611 = vsyncpa [#allocation8], 1 }
 0x146   :  { %613 = vsyncpa [#allocation8 + $0x1], 1 }

</bundles_post_ra>
